<compile_context>
chip_gen: v6e
topology: v6e:2x2x1
jax: 0.10.0
libtpu: 0.0.40
codegen_flags: <defaults>
</compile_context>

<pallas_src>
import numpy as np
import jax
import jax.numpy as jnp
from jax import lax
from jax.experimental import pallas as pl
from jax.experimental.pallas import tpu as pltpu

_LANES = 128


def _make_scatternd_kernel(tile_rows, n_updates, unroll):
    def kernel(rows_ref, x_ref, upd_ref, out_ref):
        # Pipelined tile copy x -> out (BlockSpec machinery double-buffers the DMAs).
        out_ref[...] = x_ref[...]

        tile_start = pl.program_id(0) * tile_rows

        def body(j, carry):
            r = rows_ref[j]                       # scalar row index from SMEM
            local = r - tile_start
            in_tile = jnp.logical_and(r >= tile_start, r < tile_start + tile_rows)

            @pl.when(in_tile)
            def _():
                # Lane-dense single-row store; sequential order over j within the
                # tile => last write wins on duplicate indices.
                out_ref[pl.ds(local, 1), :] = upd_ref[pl.ds(j, 1), :]

            return carry

        lax.fori_loop(0, n_updates, body, 0, unroll=unroll)

    return kernel


def scatter_nd(x, indices, updates):
    """ONNX ScatterND: x (d0..dn-1), indices (..., k), updates (..., dk..dn-1)."""
    data_shape = x.shape
    k = int(indices.shape[-1])
    outer = data_shape[:k]
    inner = data_shape[k:]
    R = int(np.prod(outer)) if outer else 1
    C = int(np.prod(inner)) if inner else 1

    # --- glue: flatten to (R, C) and compute flat row indices -------------------
    idx2 = indices.reshape(-1, k).astype(jnp.int32)
    n_updates = int(idx2.shape[0])

    dims = jnp.asarray(np.array(outer, dtype=np.int32))
    idx2 = jnp.where(idx2 < 0, idx2 + dims, idx2)          # negative-index support
    strides = jnp.asarray(np.array(pl.strides_from_shape(outer), dtype=np.int32))
    rows = jnp.sum(idx2 * strides, axis=-1).astype(jnp.int32)
    rows = jnp.clip(rows, 0, R - 1)                         # OOB safety (no HW check)

    x2 = x.reshape(R, C)
    upd2 = updates.reshape(n_updates, C).astype(x.dtype)

    # Lane-dense column axis: pad C up to a multiple of 128 so row stores are
    # full-lane vst rather than masked partial stores.
    if C % _LANES != 0:
        C_pad = max(_LANES, ((C + _LANES - 1) // _LANES) * _LANES)
        x2 = jnp.pad(x2, ((0, 0), (0, C_pad - C)))
        upd2 = jnp.pad(upd2, ((0, 0), (0, C_pad - C)))
    else:
        C_pad = C

    itemsize = jnp.dtype(x.dtype).itemsize

    # Row-tile size: multiple of 8 sublanes, sized so one buffer is ~2 MiB
    # (double-buffered x + out stays well under v7x's 64 MiB VMEM).
    target_tile_bytes = 2 << 20
    tile_rows = max(8, min(1024, (target_tile_bytes // max(1, C_pad * itemsize)) // 8 * 8))
    if tile_rows >= R:
        tile_rows = R                      # full-extent block (always legal)
    grid_r = pl.cdiv(R, tile_rows)

    # Short static update loops: full unroll for scheduler visibility.
    unroll = True if n_updates <= 64 else None

    tile_bytes = tile_rows * C_pad * itemsize
    upd_bytes = n_updates * C_pad * itemsize
    vmem_need = 2 * 2 * tile_bytes + 2 * upd_bytes + (2 << 20)
    vmem_limit = int(min(max(vmem_need, 16 << 20), 48 << 20))

    kernel = _make_scatternd_kernel(tile_rows, n_updates, unroll)

    grid_spec = pltpu.PrefetchScalarGridSpec(
        num_scalar_prefetch=1,                       # rows -> SMEM
        grid=(grid_r,),
        in_specs=[
            pl.BlockSpec((tile_rows, C_pad), lambda i, rows_ref: (i, 0)),     # x tile
            pl.BlockSpec((n_updates, C_pad), lambda i, rows_ref: (0, 0)),     # updates (fetched once)
        ],
        out_specs=pl.BlockSpec((tile_rows, C_pad), lambda i, rows_ref: (i, 0)),
    )

    out2 = pl.pallas_call(
        kernel,
        out_shape=jax.ShapeDtypeStruct((R, C_pad), x.dtype),
        grid_spec=grid_spec,
        compiler_params=pltpu.CompilerParams(
            dimension_semantics=("parallel",),       # tiles are independent (dups share a tile)
            vmem_limit_bytes=vmem_limit,
        ),
        cost_estimate=pl.CostEstimate(
            flops=0,
            transcendentals=0,
            bytes_accessed=int((2 * R + n_updates) * C_pad * itemsize + n_updates * 4),
        ),
    )(rows, x2, upd2)

    if C_pad != C:
        out2 = out2[:, :C]
    return out2.reshape(data_shape)


if __name__ == "__main__":
    key = jax.random.PRNGKey(0)
    kx, ku = jax.random.split(key)

    # Small shapes: data (2, 4, 16, 16), index depth k=2 -> updates (N, 16, 16).
    # Includes a duplicate index row to exercise last-write-wins.
    x = jax.random.normal(kx, (2, 4, 16, 16), dtype=jnp.float32)
    indices = jnp.array([[0, 1], [1, 3], [1, 0], [0, 1]], dtype=jnp.int32)   # (4, 2)
    updates = jax.random.normal(ku, (4, 16, 16), dtype=jnp.float32)

    out = scatter_nd(x, indices, updates)
    out = jax.block_until_ready(out)

    # Reference (numpy, sequential last-write-wins — matches the PyTorch module).
    ref = np.array(x)
    idx_np = np.array(indices)
    upd_np = np.array(updates)
    for j in range(idx_np.shape[0]):
        ref[tuple(idx_np[j])] = upd_np[j]
    np.testing.assert_allclose(np.array(out), ref, rtol=1e-6, atol=1e-6)

    print("KERNEL_OK")
</pallas_src>

<mosaic_0001>
module attributes {stable_mosaic.version = 11 : i64} {
  func.func @kernel(%arg0: i32, %arg1: memref<4xi32, #tpu.memory_space<smem>>, %arg2: memref<8x256xf32, #tpu.memory_space<vmem>>, %arg3: memref<4x256xf32, #tpu.memory_space<vmem>>, %arg4: memref<8x256xf32, #tpu.memory_space<vmem>>) attributes {dimension_semantics = [#tpu.dimension_semantics<parallel>], iteration_bounds = array<i64: 1>, scalar_prefetch = 1 : i64, scratch_operands = 0 : i64, tpu.core_type = #tpu.core_type<tc>, window_params = [{transform_indices = @transform_0, window_bounds = array<i64: 8, 256>}, {pipeline_mode = #tpu.pipeline_mode<synchronous>, transform_indices = @transform_1, window_bounds = array<i64: 4, 256>}, {transform_indices = @transform_2, window_bounds = array<i64: 8, 256>}]} {
    %c0 = arith.constant 0 : index
    %c0_0 = arith.constant 0 : index
    %0 = vector.load %arg2[%c0, %c0_0] : memref<8x256xf32, #tpu.memory_space<vmem>>, vector<8x256xf32>
    %c0_1 = arith.constant 0 : index
    %c0_2 = arith.constant 0 : index
    %1 = vector.load %arg4[%c0_1, %c0_2] : memref<8x256xf32, #tpu.memory_space<vmem>>, vector<8x256xf32>
    tpu.vector_store %arg4[%c0_1, %c0_2], %0 {strides = array<i32>} : memref<8x256xf32, #tpu.memory_space<vmem>>, vector<8x256xf32>,
    %c8_i32 = arith.constant 8 : i32
    %2 = arith.muli %arg0, %c8_i32 : i32
    %c0_i32 = arith.constant 0 : i32
    %3 = arith.index_cast %c0_i32 : i32 to index
    %4 = memref.load %arg1[%3] : memref<4xi32, #tpu.memory_space<smem>>
    %5 = arith.subi %4, %2 : i32
    %6 = arith.cmpi sge, %4, %2 : i32
    %c8_i32_3 = arith.constant 8 : i32
    %7 = arith.addi %2, %c8_i32_3 : i32
    %8 = arith.cmpi slt, %4, %7 : i32
    %9 = arith.andi %6, %8 : i1
    %10 = arith.extui %9 : i1 to i32
    %c0_i32_4 = arith.constant 0 : i32
    %11 = arith.cmpi ne, %10, %c0_i32_4 : i32
    scf.if %11 {
      %39 = arith.index_cast %c0_i32 : i32 to index
      %c0_11 = arith.constant 0 : index
      %40 = vector.load %arg3[%39, %c0_11] : memref<4x256xf32, #tpu.memory_space<vmem>>, vector<1x256xf32>
      %41 = arith.index_cast %5 : i32 to index
      %c0_12 = arith.constant 0 : index
      %42 = vector.load %arg4[%41, %c0_12] : memref<8x256xf32, #tpu.memory_space<vmem>>, vector<1x256xf32>
      tpu.vector_store %arg4[%41, %c0_12], %40 {strides = array<i32>} : memref<8x256xf32, #tpu.memory_space<vmem>>, vector<1x256xf32>,
    } else {
    }
    %c1_i32 = arith.constant 1 : i32
    %12 = arith.index_cast %c1_i32 : i32 to index
    %13 = memref.load %arg1[%12] : memref<4xi32, #tpu.memory_space<smem>>
    %14 = arith.subi %13, %2 : i32
    %15 = arith.cmpi sge, %13, %2 : i32
    %c8_i32_5 = arith.constant 8 : i32
    %16 = arith.addi %2, %c8_i32_5 : i32
    %17 = arith.cmpi slt, %13, %16 : i32
    %18 = arith.andi %15, %17 : i1
    %19 = arith.extui %18 : i1 to i32
    %c0_i32_6 = arith.constant 0 : i32
    %20 = arith.cmpi ne, %19, %c0_i32_6 : i32
    scf.if %20 {
      %39 = arith.index_cast %c1_i32 : i32 to index
      %c0_11 = arith.constant 0 : index
      %40 = vector.load %arg3[%39, %c0_11] : memref<4x256xf32, #tpu.memory_space<vmem>>, vector<1x256xf32>
      %41 = arith.index_cast %14 : i32 to index
      %c0_12 = arith.constant 0 : index
      %42 = vector.load %arg4[%41, %c0_12] : memref<8x256xf32, #tpu.memory_space<vmem>>, vector<1x256xf32>
      tpu.vector_store %arg4[%41, %c0_12], %40 {strides = array<i32>} : memref<8x256xf32, #tpu.memory_space<vmem>>, vector<1x256xf32>,
    } else {
    }
    %c2_i32 = arith.constant 2 : i32
    %21 = arith.index_cast %c2_i32 : i32 to index
    %22 = memref.load %arg1[%21] : memref<4xi32, #tpu.memory_space<smem>>
    %23 = arith.subi %22, %2 : i32
    %24 = arith.cmpi sge, %22, %2 : i32
    %c8_i32_7 = arith.constant 8 : i32
    %25 = arith.addi %2, %c8_i32_7 : i32
    %26 = arith.cmpi slt, %22, %25 : i32
    %27 = arith.andi %24, %26 : i1
    %28 = arith.extui %27 : i1 to i32
    %c0_i32_8 = arith.constant 0 : i32
    %29 = arith.cmpi ne, %28, %c0_i32_8 : i32
    scf.if %29 {
      %39 = arith.index_cast %c2_i32 : i32 to index
      %c0_11 = arith.constant 0 : index
      %40 = vector.load %arg3[%39, %c0_11] : memref<4x256xf32, #tpu.memory_space<vmem>>, vector<1x256xf32>
      %41 = arith.index_cast %23 : i32 to index
      %c0_12 = arith.constant 0 : index
      %42 = vector.load %arg4[%41, %c0_12] : memref<8x256xf32, #tpu.memory_space<vmem>>, vector<1x256xf32>
      tpu.vector_store %arg4[%41, %c0_12], %40 {strides = array<i32>} : memref<8x256xf32, #tpu.memory_space<vmem>>, vector<1x256xf32>,
    } else {
    }
    %c3_i32 = arith.constant 3 : i32
    %30 = arith.index_cast %c3_i32 : i32 to index
    %31 = memref.load %arg1[%30] : memref<4xi32, #tpu.memory_space<smem>>
    %32 = arith.subi %31, %2 : i32
    %33 = arith.cmpi sge, %31, %2 : i32
    %c8_i32_9 = arith.constant 8 : i32
    %34 = arith.addi %2, %c8_i32_9 : i32
    %35 = arith.cmpi slt, %31, %34 : i32
    %36 = arith.andi %33, %35 : i1
    %37 = arith.extui %36 : i1 to i32
    %c0_i32_10 = arith.constant 0 : i32
    %38 = arith.cmpi ne, %37, %c0_i32_10 : i32
    scf.if %38 {
      %39 = arith.index_cast %c3_i32 : i32 to index
      %c0_11 = arith.constant 0 : index
      %40 = vector.load %arg3[%39, %c0_11] : memref<4x256xf32, #tpu.memory_space<vmem>>, vector<1x256xf32>
      %41 = arith.index_cast %32 : i32 to index
      %c0_12 = arith.constant 0 : index
      %42 = vector.load %arg4[%41, %c0_12] : memref<8x256xf32, #tpu.memory_space<vmem>>, vector<1x256xf32>
      tpu.vector_store %arg4[%41, %c0_12], %40 {strides = array<i32>} : memref<8x256xf32, #tpu.memory_space<vmem>>, vector<1x256xf32>,
    } else {
    }
    %c4_i32 = arith.constant 4 : i32
    return
  }
  func.func @transform_0(%arg0: i32, %arg1: memref<4xi32, #tpu.memory_space<smem>>) -> (i32, i32) {
    %c0_i32 = arith.constant 0 : i32
    %c0_i32_0 = arith.constant 0 : i32
    return %arg0, %c0_i32 : i32, i32
  }
  func.func @transform_1(%arg0: i32, %arg1: memref<4xi32, #tpu.memory_space<smem>>) -> (i32, i32) {
    %c0_i32 = arith.constant 0 : i32
    %c0_i32_0 = arith.constant 0 : i32
    %c0_i32_1 = arith.constant 0 : i32
    return %c0_i32, %c0_i32_0 : i32, i32
  }
  func.func @transform_2(%arg0: i32, %arg1: memref<4xi32, #tpu.memory_space<smem>>) -> (i32, i32) {
    %c0_i32 = arith.constant 0 : i32
    %c0_i32_0 = arith.constant 0 : i32
    return %arg0, %c0_i32 : i32, i32
  }
}

</mosaic_0001>

<bundles_post_ra>
// kernel: tpu_custom_call.1
= control target key start
LH: loop header
LB: loop body
LE: loop exit
PB: predicated region body
PF: predicated region fallthrough
CT: control target
= control target key end

     0   :  { %s265_s12 = smov [#allocation3]   ;;  %s301_s0 = inlined_call_operand.hbm [shape: s32[4], index: 0, kind: input, shape index: {}]   ;;  %s302_s1 = inlined_call_operand.hbm [shape: f32[8,256], index: 1, kind: input, shape index: {}]   ;;  %s303_s2 = inlined_call_operand.hbm [shape: f32[4,256], index: 2, kind: input, shape index: {}]   ;;  %s304_s3 = inlined_call_operand.hbm [shape: f32[8,256], index: 3, kind: output, shape index: {}]  }
   0x1   :  { %9 = dma.hbm_to_smem %s301_s0, 16, %s265_s12, [#allocation2] }
   0x2   :  { %257 = dma.done.wait [#allocation2], 16 }
   0x3   :  { %258 = vsyncadd [#allocation2], 4294967280 }
   0x4   :  { %11 = sfence }
   0x5   :  { %12 = vsyncpa [#allocation5], 0 }
   0x6   :  { %13 = vsyncpa [#allocation8], 0 }
   0x7   :  { %14 = vsyncpa [#allocation6], 0  ;;  %s266_s15 = smov [#allocation4]   ;;  %s267_s17 = smov [#allocation7]  }
   0x8   :  { %s21_s16 = sshll.u32 %s266_s15, 4  ;;  %s31_s18 = sshll.u32 %s267_s17, 4  ;;  %s22_s16 = int_to_ptr.vmem [resolvable:$true] %s21_s16  ;;  %s32_s18 = int_to_ptr.vmem [resolvable:$true] %s31_s18 }
   0x9   :  { %s205_s19 = scalar_lea.vmem %s22_s16, 256  ;;  %p210_p1 = scmp.lt.s32.totalorder %s22_s16, %s22_s16 }
   0xa   :  { %p206_p0 = scmp.ne.s32.totalorder %s22_s16, %s205_s19  ;;  %p211_p2 = scmp.lt.s32.totalorder %s205_s19, %s205_s19 }
   0xc   :  { %p212_p3 = por %p211_p2, %p210_p1 }
   0xe   :  { %p213_p4 = pnand %p212_p3, %p206_p0 }
  0x10   :  { %216 = shalt.err (!%p213_p4)
}
  0x11   :  { %24 = dma.hbm_to_vmem [thread:$0]  %s302_s1, 256, %s22_s16, [#allocation5]  }
  0x12   :  { %s225_s21 = scalar_lea.vmem %s32_s18, 128  ;;  %p230_p6 = scmp.lt.s32.totalorder %s32_s18, %s32_s18 }
  0x13   :  { %p226_p5 = scmp.ne.s32.totalorder %s32_s18, %s225_s21  ;;  %p231_p7 = scmp.lt.s32.totalorder %s225_s21, %s225_s21 }
  0x15   :  { %p232_p8 = por %p231_p7, %p230_p6 }
  0x17   :  { %p233_p9 = pnand %p232_p8, %p226_p5 }
  0x19   :  { %236 = shalt.err (!%p233_p9)
}
  0x1a   :  { %34 = dma.hbm_to_vmem [thread:$0]  %s303_s2, 128, %s32_s18, [#allocation8]  }
  0x1b   :  { %259 = dma.done.wait [#allocation5], 256  }
  0x1c   :  { %260 = vsyncadd [#allocation5], 4294967040 }
  0x1d   :  { %261 = dma.done.wait [#allocation8], 128  }
  0x1e   :  { %262 = vsyncadd [#allocation8], 4294967168  ;;  %s46_s24 = sld [smem:[#allocation3]]  ;;  %v41_v0 = vld [vmem:[#allocation4] sm:$0xff]  ;;  %v42_v1 = vld [vmem:[#allocation4 + $0x8] sm:$0xff] }
  0x1f   :  { %43 = vst [vmem:[#allocation9] sm:$0xff] %v41_v0  ;;  %44 = vst [vmem:[#allocation9 + $0x8] sm:$0xff] %v42_v1 }
  0x24   :  { %p48_p10 = scmp.ge.s32.totalorder %s46_s24, 0  ;;  %p50_p11 = scmp.lt.s32.totalorder %s46_s24, 8 }
  0x26   :  { %p51_p12 = pnand %p50_p11, %p48_p10 }
  0x27   :  { %s60_s1 = sshra.s32 (!%p51_p12), %s46_s24, 3  ;;  %s63_s25 = sand.u32 (!%p51_p12), 7, %s46_s24 }
  0x28   :  { %54 = sbr.rel (%p51_p12) target bundleno = 49 (0x31), region = 21  ;;  %s181_s26 = sshll.u32 (!%p51_p12), %s60_s1, 4 }
  0x29   :  { %s66_s2 = sadd.s32 (!%p51_p12), %s181_s26, %s63_s25 }
  0x2a   :  { %s67_s27 = scalar_lea.vmem (!%p51_p12), [#allocation9], %s66_s2 }
  0x2d   :  { %v56_v2 = vlaneseq  ;;  %v55_v3 = vld [vmem:[#allocation7] ss:$4 sm:$0x3] }
  0x2f   :  { %vm58_vm0 = vcmp.lt.s32.totalorder %v56_v2, 256 }
  0x30   :  { %68 = vst.msk [vmem:[%s67_s27] ss:$8 sm:$0x3] %vm58_vm0, %v55_v3 }
  0x31 PF:  { %s172_s28 = sld [smem:[#allocation3 + $0x1]] }
  0x37   :  { %p72_p13 = scmp.ge.s32.totalorder %s172_s28, 0  ;;  %p73_p0 = scmp.lt.s32.totalorder %s172_s28, 8 }
  0x39   :  { %p74_p1 = pnand %p73_p0, %p72_p13 }
  0x3a   :  { %s84_s29 = sshra.s32 (!%p74_p1), %s172_s28, 3  ;;  %s87_s30 = sand.u32 (!%p74_p1), 7, %s172_s28 }
  0x3b   :  { %77 = sbr.rel (%p74_p1) target bundleno = 68 (0x44), region = 25  ;;  %s182_s4 = sshll.u32 (!%p74_p1), %s84_s29, 4 }
  0x3c   :  { %s90_s5 = sadd.s32 (!%p74_p1), %s182_s4, %s87_s30 }
  0x3d   :  { %s91_s6 = scalar_lea.vmem (!%p74_p1), [#allocation9], %s90_s5 }
  0x40   :  { %v80_v4 = vlaneseq  ;;  %v79_v5 = vld [vmem:[#allocation7 + $0x1] ss:$4 sm:$0x3] }
  0x42   :  { %vm82_vm1 = vcmp.lt.s32.totalorder %v80_v4, 256 }
  0x43   :  { %92 = vst.msk [vmem:[%s91_s6] ss:$8 sm:$0x3] %vm82_vm1, %v79_v5 }
  0x44 PF:  { %s175_s7 = sld [smem:[#allocation3 + $0x2]] }
  0x4a   :  { %p96_p2 = scmp.ge.s32.totalorder %s175_s7, 0  ;;  %p97_p3 = scmp.lt.s32.totalorder %s175_s7, 8 }
  0x4c   :  { %p98_p4 = pnand %p97_p3, %p96_p2 }
  0x4d   :  { %s108_s8 = sshra.s32 (!%p98_p4), %s175_s7, 3  ;;  %s111_s9 = sand.u32 (!%p98_p4), 7, %s175_s7 }
  0x4e   :  { %101 = sbr.rel (%p98_p4) target bundleno = 87 (0x57), region = 29  ;;  %s183_s10 = sshll.u32 (!%p98_p4), %s108_s8, 4 }
  0x4f   :  { %s114_s11 = sadd.s32 (!%p98_p4), %s183_s10, %s111_s9 }
  0x50   :  { %s115_s12 = scalar_lea.vmem (!%p98_p4), [#allocation9], %s114_s11 }
  0x53   :  { %v104_v6 = vlaneseq  ;;  %v103_v7 = vld [vmem:[#allocation7 + $0x2] ss:$4 sm:$0x3] }
  0x55   :  { %vm106_vm2 = vcmp.lt.s32.totalorder %v104_v6, 256 }
  0x56   :  { %116 = vst.msk [vmem:[%s115_s12] ss:$8 sm:$0x3] %vm106_vm2, %v103_v7 }
  0x57 PF:  { %s178_s13 = sld [smem:[#allocation3 + $0x3]] }
  0x5d   :  { %p120_p5 = scmp.ge.s32.totalorder %s178_s13, 0  ;;  %p121_p6 = scmp.lt.s32.totalorder %s178_s13, 8 }
  0x5f   :  { %p122_p7 = pnand %p121_p6, %p120_p5 }
  0x60   :  { %s132_s14 = sshra.s32 (!%p122_p7), %s178_s13, 3  ;;  %s135_s15 = sand.u32 (!%p122_p7), 7, %s178_s13 }
  0x61   :  { %125 = sbr.rel (%p122_p7) target bundleno = 106 (0x6a), region = 33  ;;  %s184_s16 = sshll.u32 (!%p122_p7), %s132_s14, 4 }
  0x62   :  { %s138_s17 = sadd.s32 (!%p122_p7), %s184_s16, %s135_s15 }
  0x63   :  { %s139_s18 = scalar_lea.vmem (!%p122_p7), [#allocation9], %s138_s17 }
  0x66   :  { %v128_v8 = vlaneseq  ;;  %v127_v9 = vld [vmem:[#allocation7 + $0x3] ss:$4 sm:$0x3] }
  0x68   :  { %vm130_vm3 = vcmp.lt.s32.totalorder %v128_v8, 256 }
  0x69   :  { %140 = vst.msk [vmem:[%s139_s18] ss:$8 sm:$0x3] %vm130_vm3, %v127_v9 }
  0x6a PF:  { %s268_s19 = smov [#allocation9]  }
  0x6b   :  { %s148_s0 = sshll.u32 %s268_s19, 4  ;;  %s149_s0 = int_to_ptr.vmem [resolvable:$true] %s148_s0 }
  0x6c   :  { %s237_s20 = scalar_lea.vmem %s149_s0, 256  ;;  %p242_p9 = scmp.lt.s32.totalorder %s149_s0, %s149_s0 }
  0x6d   :  { %p238_p8 = scmp.ne.s32.totalorder %s149_s0, %s237_s20  ;;  %p243_p10 = scmp.lt.s32.totalorder %s237_s20, %s237_s20 }
  0x6f   :  { %p244_p11 = por %p243_p10, %p242_p9 }
  0x71   :  { %p245_p12 = pnand %p244_p11, %p238_p8 }
  0x73   :  { %248 = shalt.err (!%p245_p12)
}
  0x74   :  { %151 = dma.vmem_to_hbm [thread:$0]  %s149_s0, 256, %s304_s3, [#allocation6]  }
  0x75   :  { %263 = dma.done.wait [#allocation6], 256  }
  0x76   :  { %264 = vsyncadd [#allocation6], 4294967040 }
  0x77   :  { %155 = vsyncpa [#allocation5], 1 }
  0x78   :  { %156 = vsyncpa [#allocation8], 1 }
  0x79   :  { %157 = vsyncpa [#allocation6], 1 }

</bundles_post_ra>
